<compile_context>
chip_gen: v7x
topology: tpu7x:2x2x1
jax: 0.10.0
libtpu: 0.0.40
codegen_flags: <defaults>
</compile_context>

<pallas_src>
import functools

import jax
import jax.numpy as jnp
from jax.experimental import pallas as pl
from jax.experimental.pallas import tpu as pltpu


def freq_adjust_kernel(re_ref, im_ref, w_ref, b_ref, ro_ref, io_ref,
                       *, two_c, use_mxu):
    # Blocks are (1, 2C, T); index away the batch block -> (2C, T).
    re = re_ref[0]
    im = im_ref[0]

    # |z| via one EUP rsqrt per element:
    #   inv = rsqrt(re^2 + im^2),  |z| = sq * inv,
    #   cos(angle z) = re * inv, sin(angle z) = im * inv,
    # with torch's convention angle(0) = 0  ->  cos = 1, sin = 0.
    sq = re * re + im * im
    inv = jnp.where(sq > 0.0, jax.lax.rsqrt(sq), 0.0)
    amp_in = sq * inv                                   # rows: [amp1 ; amp2]

    # amp_conv (1x1 Conv2d, 2C -> C) fused into a single matmul with the
    # row-duplicated weight Wd (2C, 2C) and bias bd (2C, 1):
    #   amp_full = Wd @ amp_in + bd = [amp ; amp]       (2C, T)
    if use_mxu:
        amp_full = jnp.dot(w_ref[...], amp_in,
                           preferred_element_type=jnp.float32) + b_ref[...]
    else:
        # Tiny-C fallback (2C < 8): unrolled VPU MAC.
        w = w_ref[...]                                  # (2C, 2C)
        acc = jnp.broadcast_to(b_ref[...], amp_in.shape)
        for k in range(two_c):
            acc = acc + w[:, k:k + 1] * amp_in[k:k + 1, :]
        amp_full = acc

    amp2x = amp_full + amp_full                         # amp * (cos + cos)

    # Phases computed AFTER the conv: only `inv` stays live across the dot.
    cos = jnp.where(inv > 0.0, re * inv, 1.0)           # angle(0) = 0 -> cos 1
    sin = im * inv                                      #              -> sin 0

    ro_ref[0] = amp2x * cos
    io_ref[0] = amp2x * sin


def _pick_tile_hw(hw_padded, c2, batch, vmem_budget_bytes):
    """Largest multiple of 128 dividing hw_padded that (a) fits the VMEM
    budget (double-buffered 2-in/2-out streams + ~5 in-kernel temporaries)
    and (b) leaves >= 4 grid steps so both v7x TensorCores stay busy."""
    per_lane_bytes = (2 * 4 + 5) * c2 * 4        # 2x(2in+2out) bufs + ~5 temps
    cap = max(128, vmem_budget_bytes // per_lane_bytes)
    cap = min(cap, 8192)                         # diminishing returns past ~8k
    min_steps = 4                                # >= 2 per v7x TensorCore
    if batch < min_steps:
        per_batch = -(-min_steps // batch)       # ceil
        cap = min(cap, max(128, hw_padded // per_batch))
    cap = min(cap, hw_padded)
    cap = max(128, (cap // 128) * 128)
    best = 128
    for t in range(256, cap + 1, 128):
        if hw_padded % t == 0:
            best = t
    return best


def frequency_adjust(vi, ir, amp_conv_w, amp_conv_b):
    """vi, ir: (B, C, H, W) float32.  amp_conv_w: (C, 2C, 1, 1), amp_conv_b: (C,).
    Returns (B, 2C, H, W) = cat([out1, out2], dim=1)."""
    B, C, H, W = vi.shape
    C2 = 2 * C
    HW = H * W

    # TODO(synk): FFT / IFFT have no Pallas TPU lowering; done in plain JAX.
    # Stack vi/ir on the channel axis so one fft2 handles both streams and
    # the kernel sees a sublane-dense (2C) channel dim.
    x = jnp.concatenate([vi, ir], axis=1).astype(jnp.float32)    # (B, 2C, H, W)
    f = jnp.fft.fft2(x)

    # Lane-dense, transpose-free layout: (B, 2C, H*W). Spatial axis -> lanes.
    re = jnp.real(f).reshape(B, C2, HW).astype(jnp.float32)
    im = jnp.imag(f).reshape(B, C2, HW).astype(jnp.float32)

    # Pad the spatial axis to a multiple of 128 (never a full-extent block).
    HWp = ((HW + 127) // 128) * 128
    if HWp != HW:
        re = jnp.pad(re, ((0, 0), (0, 0), (0, HWp - HW)))
        im = jnp.pad(im, ((0, 0), (0, 0), (0, HWp - HW)))

    # Per-chip VMEM budgeting (v7x: 64 MiB physical; v5e/v6e: 128 MiB).
    try:
        vmem_cap = int(pltpu.get_tpu_info().vmem_capacity_bytes)
    except Exception:
        vmem_cap = 64 * 1024 * 1024
    vmem_limit = min((vmem_cap * 3) // 4, 64 * 1024 * 1024)
    tile_hw = _pick_tile_hw(HWp, C2, B, (vmem_limit * 3) // 4)
    grid = (B, HWp // tile_hw)

    # Row-duplicated 1x1-conv weight: Wd = [[W],[W]] (2C, 2C), bd = [b; b].
    w2d = amp_conv_w[:, :, 0, 0].astype(jnp.float32)             # (C, 2C)
    wd = jnp.concatenate([w2d, w2d], axis=0)                     # (2C, 2C)
    bd = jnp.concatenate([amp_conv_b, amp_conv_b]).reshape(C2, 1).astype(jnp.float32)

    data_spec = pl.BlockSpec((1, C2, tile_hw), lambda b, i: (b, 0, i))
    w_spec = pl.BlockSpec((C2, C2), lambda b, i: (0, 0))
    b_spec = pl.BlockSpec((C2, 1), lambda b, i: (0, 0))
    out_sds = jax.ShapeDtypeStruct((B, C2, HWp), jnp.float32)

    kernel = functools.partial(freq_adjust_kernel,
                               two_c=C2, use_mxu=(C2 >= 8))

    n_elem = B * C2 * HWp
    cost = pl.CostEstimate(
        flops=int(n_elem * (12 + 2 * C2)),
        transcendentals=int(n_elem),
        bytes_accessed=int(4 * n_elem * 4 + (C2 * C2 + C2) * 4),
    )

    ro, io = pl.pallas_call(
        kernel,
        out_shape=(out_sds, out_sds),
        grid_spec=pltpu.PrefetchScalarGridSpec(
            num_scalar_prefetch=0,
            grid=grid,
            in_specs=[data_spec, data_spec, w_spec, b_spec],
            out_specs=[data_spec, data_spec],
        ),
        compiler_params=pltpu.CompilerParams(
            dimension_semantics=("parallel", "parallel"),
            vmem_limit_bytes=int(vmem_limit)),
        cost_estimate=cost,
    )(re, im, wd, bd)

    if HWp != HW:
        ro = ro[:, :, :HW]
        io = io[:, :, :HW]
    ro = ro.reshape(B, C2, H, W)
    io = io.reshape(B, C2, H, W)

    # Channel-stacked ifft2: rows [:C] give out1, rows [C:] give out2, so the
    # result IS cat([out1, out2], dim=1) -- no trailing concatenate needed.
    out = jnp.abs(jnp.fft.ifft2(jax.lax.complex(ro, io))).astype(jnp.float32)
    return out


if __name__ == "__main__":
    key = jax.random.PRNGKey(0)
    k_vi, k_ir, k_w, k_b = jax.random.split(key, 4)

    B, C, H, W = 2, 4, 16, 16
    vi = jax.random.normal(k_vi, (B, C, H, W), dtype=jnp.float32)
    ir = jax.random.normal(k_ir, (B, C, H, W), dtype=jnp.float32)

    # Deterministic synthetic parameters for amp_conv: Conv2d(2C -> C, k=1).
    fan_in = 2 * C
    bound = 1.0 / jnp.sqrt(fan_in)
    amp_conv_w = jax.random.uniform(k_w, (C, 2 * C, 1, 1),
                                    minval=-bound, maxval=bound,
                                    dtype=jnp.float32)
    amp_conv_b = jax.random.uniform(k_b, (C,), minval=-bound, maxval=bound,
                                    dtype=jnp.float32)

    out = frequency_adjust(vi, ir, amp_conv_w, amp_conv_b)
    jax.block_until_ready(out)
    assert out.shape == (B, 2 * C, H, W)
    print("KERNEL_OK")
</pallas_src>

<mosaic_0001>
module attributes {stable_mosaic.version = 11 : i64} {
  func.func @freq_adjust_kernel(%arg0: i32, %arg1: i32, %arg2: memref<1x8x128xf32, #tpu.memory_space<vmem>>, %arg3: memref<1x8x128xf32, #tpu.memory_space<vmem>>, %arg4: memref<8x8xf32, #tpu.memory_space<vmem>>, %arg5: memref<8x1xf32, #tpu.memory_space<vmem>>, %arg6: memref<1x8x128xf32, #tpu.memory_space<vmem>>, %arg7: memref<1x8x128xf32, #tpu.memory_space<vmem>>) attributes {dimension_semantics = [#tpu.dimension_semantics<parallel>, #tpu.dimension_semantics<parallel>], iteration_bounds = array<i64: 2, 2>, scalar_prefetch = 0 : i64, scratch_operands = 0 : i64, tpu.core_type = #tpu.core_type<tc>, window_params = [{transform_indices = @transform_0, window_bounds = array<i64: 1, 8, 128>}, {transform_indices = @transform_1, window_bounds = array<i64: 1, 8, 128>}, {pipeline_mode = #tpu.pipeline_mode<synchronous>, transform_indices = @transform_2, window_bounds = array<i64: 8, 8>}, {pipeline_mode = #tpu.pipeline_mode<synchronous>, transform_indices = @transform_3, window_bounds = array<i64: 8, 1>}, {transform_indices = @transform_4, window_bounds = array<i64: 1, 8, 128>}, {transform_indices = @transform_5, window_bounds = array<i64: 1, 8, 128>}]} {
    %c0 = arith.constant 0 : index
    %c0_0 = arith.constant 0 : index
    %c0_1 = arith.constant 0 : index
    %0 = vector.load %arg2[%c0, %c0_0, %c0_1] : memref<1x8x128xf32, #tpu.memory_space<vmem>>, vector<1x8x128xf32>
    %1 = vector.shape_cast %0 : vector<1x8x128xf32> to vector<8x128xf32>
    %c0_2 = arith.constant 0 : index
    %c0_3 = arith.constant 0 : index
    %c0_4 = arith.constant 0 : index
    %2 = vector.load %arg3[%c0_2, %c0_3, %c0_4] : memref<1x8x128xf32, #tpu.memory_space<vmem>>, vector<1x8x128xf32>
    %3 = vector.shape_cast %2 : vector<1x8x128xf32> to vector<8x128xf32>
    %4 = arith.mulf %1, %1 : vector<8x128xf32>
    %5 = arith.mulf %3, %3 : vector<8x128xf32>
    %6 = arith.addf %4, %5 : vector<8x128xf32>
    %cst = arith.constant 0.000000e+00 : f32
    %7 = vector.broadcast %cst : f32 to vector<8x128xf32>
    %8 = arith.cmpf ogt, %6, %7 : vector<8x128xf32>
    %9 = math.rsqrt %6 : vector<8x128xf32>
    %cst_5 = arith.constant 0.000000e+00 : f32
    %10 = vector.broadcast %cst_5 : f32 to vector<8x128xf32>
    %11 = arith.select %8, %9, %10 : vector<8x128xi1>, vector<8x128xf32>
    %12 = arith.mulf %6, %11 : vector<8x128xf32>
    %c0_6 = arith.constant 0 : index
    %c0_7 = arith.constant 0 : index
    %13 = vector.load %arg4[%c0_6, %c0_7] : memref<8x8xf32, #tpu.memory_space<vmem>>, vector<8x8xf32>
    %cst_8 = arith.constant dense<0.000000e+00> : vector<8x128xf32>
    %14 = tpu.matmul %13, %12, %cst_8 {dimension_numbers = #tpu.dot_dimension_numbers<[1], [0], [0], [1], [0, 0, 1, 1], [], []>} : vector<8x8xf32>, vector<8x128xf32>, vector<8x128xf32> -> vector<8x128xf32>
    %c0_9 = arith.constant 0 : index
    %c0_10 = arith.constant 0 : index
    %15 = vector.load %arg5[%c0_9, %c0_10] : memref<8x1xf32, #tpu.memory_space<vmem>>, vector<8x1xf32>
    %16 = vector.broadcast %15 : vector<8x1xf32> to vector<8x128xf32>
    %17 = arith.addf %14, %16 : vector<8x128xf32>
    %18 = arith.addf %17, %17 : vector<8x128xf32>
    %cst_11 = arith.constant 0.000000e+00 : f32
    %19 = vector.broadcast %cst_11 : f32 to vector<8x128xf32>
    %20 = arith.cmpf ogt, %11, %19 : vector<8x128xf32>
    %21 = arith.mulf %1, %11 : vector<8x128xf32>
    %cst_12 = arith.constant 1.000000e+00 : f32
    %22 = vector.broadcast %cst_12 : f32 to vector<8x128xf32>
    %23 = arith.select %20, %21, %22 : vector<8x128xi1>, vector<8x128xf32>
    %24 = arith.mulf %3, %11 : vector<8x128xf32>
    %25 = arith.mulf %18, %23 : vector<8x128xf32>
    %c0_13 = arith.constant 0 : index
    %c0_14 = arith.constant 0 : index
    %c0_15 = arith.constant 0 : index
    %26 = vector.load %arg6[%c0_13, %c0_14, %c0_15] : memref<1x8x128xf32, #tpu.memory_space<vmem>>, vector<1x8x128xf32>
    %27 = vector.shape_cast %26 : vector<1x8x128xf32> to vector<8x128xf32>
    %28 = vector.shape_cast %25 : vector<8x128xf32> to vector<1x8x128xf32>
    tpu.vector_store %arg6[%c0_13, %c0_14, %c0_15], %28 {strides = array<i32>} : memref<1x8x128xf32, #tpu.memory_space<vmem>>, vector<1x8x128xf32>,
    %29 = arith.mulf %18, %24 : vector<8x128xf32>
    %c0_16 = arith.constant 0 : index
    %c0_17 = arith.constant 0 : index
    %c0_18 = arith.constant 0 : index
    %30 = vector.load %arg7[%c0_16, %c0_17, %c0_18] : memref<1x8x128xf32, #tpu.memory_space<vmem>>, vector<1x8x128xf32>
    %31 = vector.shape_cast %30 : vector<1x8x128xf32> to vector<8x128xf32>
    %32 = vector.shape_cast %29 : vector<8x128xf32> to vector<1x8x128xf32>
    tpu.vector_store %arg7[%c0_16, %c0_17, %c0_18], %32 {strides = array<i32>} : memref<1x8x128xf32, #tpu.memory_space<vmem>>, vector<1x8x128xf32>,
    return
  }
  func.func @transform_0(%arg0: i32, %arg1: i32) -> (i32, i32, i32) {
    %c0_i32 = arith.constant 0 : i32
    %c0_i32_0 = arith.constant 0 : i32
    return %arg0, %c0_i32, %arg1 : i32, i32, i32
  }
  func.func @transform_1(%arg0: i32, %arg1: i32) -> (i32, i32, i32) {
    %c0_i32 = arith.constant 0 : i32
    %c0_i32_0 = arith.constant 0 : i32
    return %arg0, %c0_i32, %arg1 : i32, i32, i32
  }
  func.func @transform_2(%arg0: i32, %arg1: i32) -> (i32, i32) {
    %c0_i32 = arith.constant 0 : i32
    %c0_i32_0 = arith.constant 0 : i32
    %c0_i32_1 = arith.constant 0 : i32
    return %c0_i32, %c0_i32_0 : i32, i32
  }
  func.func @transform_3(%arg0: i32, %arg1: i32) -> (i32, i32) {
    %c0_i32 = arith.constant 0 : i32
    %c0_i32_0 = arith.constant 0 : i32
    %c0_i32_1 = arith.constant 0 : i32
    return %c0_i32, %c0_i32_0 : i32, i32
  }
  func.func @transform_4(%arg0: i32, %arg1: i32) -> (i32, i32, i32) {
    %c0_i32 = arith.constant 0 : i32
    %c0_i32_0 = arith.constant 0 : i32
    return %arg0, %c0_i32, %arg1 : i32, i32, i32
  }
  func.func @transform_5(%arg0: i32, %arg1: i32) -> (i32, i32, i32) {
    %c0_i32 = arith.constant 0 : i32
    %c0_i32_0 = arith.constant 0 : i32
    return %arg0, %c0_i32, %arg1 : i32, i32, i32
  }
}

</mosaic_0001>

<bundles_post_ra>
// kernel: tpu_custom_call.1
= control target key start
LH: loop header
LB: loop body
LE: loop exit
PB: predicated region body
PF: predicated region fallthrough
CT: control target
= control target key end

     0   :  { %s1235_s0 = inlined_call_operand.hbm [shape: f32[2,8,256], index: 0, kind: input, shape index: {}]   ;;  %s1236_s1 = inlined_call_operand.hbm [shape: f32[2,8,256], index: 1, kind: input, shape index: {}]   ;;  %s1237_s2 = inlined_call_operand.vmem [shape: f32[8,8], index: 2, kind: input, shape index: {}]   ;;  %s1238_s3 = inlined_call_operand.vmem [shape: f32[8,1], index: 3, kind: input, shape index: {}]   ;;  %s1239_s4 = inlined_call_operand.hbm [shape: f32[2,8,256], index: 4, kind: output, shape index: {0}]   ;;  %s1240_s5 = inlined_call_operand.hbm [shape: f32[2,8,256], index: 5, kind: output, shape index: {1}]  }
   0x1   :  { %1247 = sst [smem:[#allocation16_spill]] %s1235_s0 }
   0x2   :  { %11 = vsyncpa [#allocation3], 0 }
   0x3   :  { %13 = vsyncpa [#allocation3 + $0x1], 0 }
   0x4   :  { %14 = vsyncpa [#allocation6], 0 }
   0x5   :  { %16 = vsyncpa [#allocation6 + $0x1], 0 }
   0x6   :  { %17 = vsyncpa [#allocation4], 0 }
   0x7   :  { %19 = vsyncpa [#allocation4 + $0x1], 0 }
   0x8   :  { %20 = vsyncpa [#allocation9], 0 }
   0x9   :  { %22 = vsyncpa [#allocation9 + $0x1], 0  ;;  %s949_s18 = smov 0   ;;  %s951_s19 = smov 0  }
   0xa   :  { %s953_s20 = smov 0   ;;  %s955_s21 = smov 0  }
   0xb   :  { %s957_s22 = smov 0   ;;  %s959_s23 = smov 0  }
   0xc   :  { %s961_s24 = smov 0   ;;  %s963_s25 = smov 0  }
   0xd LB: > { %s591_s26 = sadd.s32 4294967295, %s910_s25   ;;  %s592_s27 = sadd.s32 4294967294, %s910_s25   ;;  %s910_s25 = sphi %s963_s25, %s28_s25   ;;  %s906_s24 = sphi %s961_s24, %s1273_s24   ;;  %s902_s23 = sphi %s959_s23, %s1272_s23   ;;  %s898_s22 = sphi %s957_s22, %s1271_s22   ;;  %s894_s21 = sphi %s955_s21, %s1270_s21   ;;  %s890_s20 = sphi %s953_s20, %s1269_s20   ;;  %s886_s19 = sphi %s951_s19, %s1268_s19   ;;  %s882_s18 = sphi %s949_s18, %s1267_s18  }
   0xe   : > { %s37_s28 = sadd.s32 1, %s902_s23  ;;  %s40_s29 = sadd.s32 1, %s906_s24 }
   0xf   : > { %p38_p0 = scmp.ge.s32.totalorder %s37_s28, 2  ;;  %s49_s30 = sadd.s32 1, %s890_s20 }
  0x10   : > { %p56_p1 = scmp.ne.s32.totalorder %s890_s20, %s886_s19  ;;  %p57_p2 = scmp.eq.s32.totalorder %s910_s25, 0 }
  0x11   : > { %s1275_s28 = smov (%p38_p0, %s37_s28), 0  ;;  %s1277_s29 = smov (!%p38_p0, %s40_s29), %s906_s24 }
  0x12   : > { %1248 = sst [smem:[#allocation14_spill]] %s1275_s28  ;;  %s45_s6 = ssub.s32 %s902_s23, %s1275_s28 }
  0x13   : > { %p1002_p3 = por %p57_p2, %p56_p1  ;;  %p42_p4 = scmp.ge.s32.totalorder %s1277_s29, 2 }
  0x14   : > { %p62_p5 = scmp.ne.s32.totalorder %s886_s19, %s882_s18  ;;  %p63_p6 = scmp.eq.s32.totalorder %s591_s26, 0 }
  0x15   : > { %p158_p7 = scmp.eq.s32.totalorder %s591_s26, 3  ;;  %s1279_s29 = smov (%p42_p4, %s1277_s29), 0 }
  0x16   : > { %1250 = sst [smem:[#allocation15_spill]] %s1279_s29  ;;  %p1010_p8 = por %p63_p6, %p62_p5 }
  0x17   : > { %p1014_p9 = por %p158_p7, %p56_p1  ;;  %s44_s10 = ssub.s32 %s906_s24, %s1279_s29 }
  0x18   : > { %s1251_s8 = scalar_select %p1010_p8, 1, 0 }
  0x19   : > { %s1252_s9 = scalar_select %p1014_p9, 1, 0 }
  0x1a   : > { %p164_p10 = scmp.eq.s32.totalorder %s592_s27, 3  ;;  %s46_s11 = sor.u32 %s45_s6, %s44_s10 }
  0x1b   : > { %p47_p11 = scmp.eq.s32.totalorder %s46_s11, 0  ;;  %p644_p13 = scmp.lt.s32.totalorder %s910_s25, 4 }
  0x1c   : > { %p1020_p12 = por %p164_p10, %p62_p5  ;;  %s1026_s13 = sand.u32 1, %s890_s20  }
  0x1d   : > { %s1029_s14 = scalar_select %p47_p11, %s890_s20, %s49_s30  }
  0x1e   : > { %s1253_s12 = scalar_select %p1020_p12, 1, 0 }
  0x1f   : > { %s1242_s15 = sshll.u32 %s1026_s13, 3  ;;  %s596_s16 = sshll.u32 %s906_s24, 1 }
  0x20   : > { %s1034_s17 = sadd.s32 %s902_s23, %s596_s16  ;;  %s222_s26 = scalar_lea.vmem [#allocation2], %s1242_s15 }
  0x21   : > { %s231_s27 = sshll.u32 %s222_s26, 4  ;;  %s1243_s6 = sshll.u32 %s1034_s17, 7  ;;  %s1039_s27 = int_to_ptr.vmem [resolvable:$true] %s231_s27 }
  0x22   : > { %s1254_s0 = sld [smem:[#allocation16_spill]]  ;;  %p1050_p0 = pnand %p644_p13, %p1002_p3 }
  0x23   : > { %s219_s16 = scalar_lea.sflag [#allocation3], %s1026_s13 }
  0x24   : > { %p718_p5 = pneg %p1050_p0 }
  0x28   : > { %s1046_s29 = scalar_lea.hbm %s1254_s0, %s1243_s6  ;;  %s721_s11 = scalar_lea.hbm %s1254_s0, 512 }
  0x29   : > { %s716_s26 = scalar_lea.hbm %s1046_s29, 128  ;;  %p722_p3 = scmp.lt.u32.totalorder %s1046_s29, %s1254_s0 }
  0x2a   : > { %p717_p4 = scmp.ne.s32.totalorder %s1046_s29, %s716_s26  ;;  %p723_p10 = scmp.lt.u32.totalorder %s721_s11, %s716_s26 }
  0x2b   : > { %p725_p13 = scmp.lt.u32.totalorder %s716_s26, %s1046_s29 }
  0x2c   : > { %p719_p6 = pnand %p718_p5, %p717_p4  ;;  %p724_p11 = por %p723_p10, %p722_p3 }
  0x2e   : > { %p720_p7 = pneg %p719_p6  ;;  %p726_p1 = por %p725_p13, %p724_p11 }
  0x30   : > { %p727_p2 = pnand %p726_p1, %p720_p7 }
  0x32   : > { %730 = shalt.err (!%p727_p2)
}
  0x33   : > { %s731_s28 = scalar_lea.vmem %s1039_s27, 128  ;;  %s912_s7 = smov [#allocation2]  }
  0x34   : > { %p732_p4 = scmp.ne.s32.totalorder %s1039_s27, %s731_s28  ;;  %s736_s10 = sshll.u32 %s912_s7, 4  ;;  %s737_s10 = int_to_ptr.vmem [resolvable:$false] %s736_s10 }
  0x35   : > { %s738_s15 = scalar_lea.vmem %s737_s10, 256  ;;  %p739_p9 = scmp.lt.s32.totalorder %s1039_s27, %s737_s10 }
  0x36   : > { %p734_p6 = pnand %p732_p4, %p718_p5  ;;  %p740_p3 = scmp.lt.s32.totalorder %s738_s15, %s731_s28 }
  0x38   : > { %p735_p12 = pneg %p734_p6  ;;  %p741_p10 = por %p740_p3, %p739_p9 }
  0x3a   : > { %p742_p11 = pnand %p741_p10, %p735_p12 }
  0x3c   : > { %745 = shalt.err (!%p742_p11)
}
  0x3d   : > { %633 = dma.hbm_to_vmem [thread:$0]  (!%p1050_p0), %s1046_s29, 128, %s1039_s27, %s219_s16  }
  0x3e   : > { %p1256_p1 = scmp.lt.s32.totalorder %s910_s25, 5  ;;  %p1257_p2 = scmp.ge.s32.totalorder %s910_s25, 1 }
  0x3f   : > { %s1259_s28 = sshll.u32 %s1034_s17, 7  ;;  %s1260_s10 = sshll.u32 %s1026_s13, 3 }
  0x40   : > { %p1086_p7 = pnand %p1257_p2, %p1256_p1  ;;  %s1095_s7 = scalar_lea.hbm %s1236_s1, %s1259_s28 }
  0x41   : > { %s242_s15 = scalar_lea.vmem [#allocation5], %s1260_s10  ;;  %s239_s29 = scalar_lea.sflag [#allocation6], %s1026_s13 }
  0x42   : > { %s1258_s6 = scalar_select %p1086_p7, 1, 0 }
  0x43   : > { %s251_s0 = sshll.u32 %s242_s15, 4  ;;  %s746_s27 = scalar_lea.hbm %s1095_s7, 128  ;;  %s252_s0 = int_to_ptr.vmem [resolvable:$true] %s251_s0 }
  0x44   : > { %p747_p9 = scmp.ne.s32.totalorder %s1095_s7, %s746_s27  ;;  %s751_s28 = scalar_lea.hbm %s1236_s1, 512 }
  0x45   : > { %p752_p4 = scmp.lt.u32.totalorder %s1095_s7, %s1236_s1  ;;  %p753_p6 = scmp.lt.u32.totalorder %s751_s28, %s746_s27 }
  0x46   : > { %p749_p12 = pnand %p747_p9, %p718_p5  ;;  %p755_p10 = scmp.lt.u32.totalorder %s746_s27, %s1095_s7 }
  0x47   : > { %p754_p3 = por %p753_p6, %p752_p4 }
  0x48   : > { %p750_p13 = pneg %p749_p12 }
  0x49   : > { %p756_p11 = por %p755_p10, %p754_p3 }
  0x4b   : > { %p757_p1 = pnand %p756_p11, %p750_p13 }
  0x4d   : > { %760 = shalt.err (!%p757_p1)
}
  0x4e   : > { %s761_s13 = scalar_lea.vmem %s252_s0, 128  ;;  %s913_s10 = smov [#allocation5]  }
  0x4f   : > { %p762_p2 = scmp.ne.s32.totalorder %s252_s0, %s761_s13  ;;  %s766_s15 = sshll.u32 %s913_s10, 4  ;;  %s767_s15 = int_to_ptr.vmem [resolvable:$false] %s766_s15 }
  0x50   : > { %s768_s17 = scalar_lea.vmem %s767_s15, 256  ;;  %p769_p8 = scmp.lt.s32.totalorder %s252_s0, %s767_s15 }
  0x51   : > { %p764_p9 = pnand %p762_p2, %p718_p5  ;;  %p770_p7 = scmp.lt.s32.totalorder %s768_s17, %s761_s13 }
  0x53   : > { %p765_p12 = pneg %p764_p9  ;;  %p771_p4 = por %p770_p7, %p769_p8 }
  0x55   : > { %p772_p6 = pnand %p771_p4, %p765_p12 }
  0x57   : > { %775 = shalt.err (!%p772_p6)
}
  0x58   : > { %636 = dma.hbm_to_vmem [thread:$0]  (!%p1050_p0), %s1095_s7, 128, %s252_s0, %s239_s29  }
  0x59   : > { %p1261_p13 = scmp.ne.s32.totalorder %s1258_s6, 0 }
  0x5a   : > { %s1122_s27 = sand.u32 (!%p1261_p13), 1, %s886_s19   ;;  %p1262_p8 = scmp.ne.s32.totalorder (!%p1261_p13), %s1251_s8, 0 }
  0x5b   : > { %260 = sbr.rel (%p1261_p13) target bundleno = 376 (0x178), region = 36  ;;  %s1125_s16 = sshll.u32 (!%p1261_p13), %s1122_s27, 3 }
  0x5c   : > { %s263_s28 = scalar_lea.sflag (!%p1261_p13), [#allocation3], %s1122_s27  ;;  %s266_s26 = scalar_lea.vmem (!%p1261_p13), [#allocation2], %s1125_s16 }
  0x62   : > { %865 = dma.done.wait (%p1262_p8), %s263_s28, 128  }
  0x63   : > { %867 = vsyncadd (%p1262_p8), %s263_s28, 4294967168  ;;  %s272_s0 = scalar_lea.sflag [#allocation6], %s1122_s27  ;;  %s275_s30 = scalar_lea.vmem [#allocation5], %s1125_s16 }
  0x64   : > { %869 = dma.done.wait (%p1262_p8), %s272_s0, 128  }
  0x65   : > { %871 = vsyncadd (%p1262_p8), %s272_s0, 4294967168  ;;  %v914_v0 = vmov 0.0   ;;  %vm915_vm0 = vmmov 0   ;;  %v916_v1 = vmov 0   ;;  %v312_v2 = vld [vmem:[%s266_s26] sm:$0xff]  ;;  %v313_v3 = vld [vmem:[%s275_s30] sm:$0xff] }
  0x66   : > { %617 = vmatprep.subr.mxu0 %v914_v0  ;;  %619 = vmatprep.mubr.msk.f32.mxu0 %vm915_vm0, %v914_v0  ;;  %v314_v4 = vmul.f32 %v312_v2, %v312_v2  ;;  %v315_v5 = vmul.f32 %v313_v3, %v313_v3  ;;  %v322_v6 = vld [vmem:[%s1238_s3] sm:$0xff]  ;;  %vm328_vm2 = vcmask 64512   ;;  %s609_s11 = sshll.u32 %s898_s22, 1  ;;  %s304_s15 = scalar_lea.vmem [#allocation7], %s1125_s16 }
  0x67   : > { %713 = vset.pattern.permute.xlu0 %v916_v1  ;;  %v321_v11 = vld [vmem:[%s1237_s2] sm:$0xff]  ;;  %s428_s13 = sadd.s32 %s894_s21, %s609_s11  ;;  %s432_s17 = sshll.u32 %s304_s15, 4  ;;  %s1154_s17 = int_to_ptr.vmem [resolvable:$true] %s432_s17 }
  0x68   : > { %325 = vperm.xlu0 %713, %v322_v6   ;;  %v316_v7 = vadd.f32 %v315_v5, %v314_v4  ;;  %s610_s10 = sshll.u32 %s428_s13, 7  ;;  %s311_s28 = scalar_lea.vmem [#allocation8], %s1125_s16 }
  0x69   : > { %s447_s26 = sshll.u32 %s311_s28, 4  ;;  %s1152_s22 = scalar_lea.hbm %s1239_s4, %s610_s10  ;;  %s1161_s26 = int_to_ptr.vmem [resolvable:$true] %s447_s26 }
  0x6a   : > { %714 = vrsqrt.f32 %v316_v7  ;;  %vm317_vm1 = vcmp.gt.f32.partialorder %v316_v7, 0.0  ;;  %s1159_s7 = scalar_lea.hbm %s1240_s5, %s610_s10  ;;  %s412_s16 = scalar_lea.sflag [#allocation4], %s1122_s27 }
  0x6b   : > { %s776_s8 = scalar_lea.vmem %s1154_s17, 128  ;;  %p1263_p5 = scmp.ne.s32.totalorder %s1252_s9, 0 }
  0x6c   : > { %p777_p0 = scmp.ne.s32.totalorder %s1154_s17, %s776_s8  ;;  %s917_s29 = smov [#allocation7]  }
  0x6d   : > { %s780_s11 = sshll.u32 %s917_s29, 4  ;;  %s781_s11 = int_to_ptr.vmem [resolvable:$false] %s780_s11 }
  0x6e   : > { %p778_p7 = pnand %p777_p0, %p1263_p5  ;;  %s782_s13 = scalar_lea.vmem %s781_s11, 256 }
  0x6f   : > { %p783_p10 = scmp.lt.s32.totalorder %s1154_s17, %s781_s11  ;;  %p784_p11 = scmp.lt.s32.totalorder %s782_s13, %s776_s8 }
  0x70   : > { %p779_p3 = pneg %p778_p7 }
  0x71   : > { %p785_p1 = por %p784_p11, %p783_p10 }
  0x73   : > { %p786_p2 = pnand %p785_p1, %p779_p3 }
  0x74   : > { %v715_v8 = vpop.eup %714 }
  0x75   : > { %v319_v9 = vsel %vm317_vm1, %v715_v8, 0.0 }
  0x76   : > { %v320_v10 = vmul.f32 %v319_v9, %v316_v7  ;;  %v404_v13 = vmul.f32 %v319_v9, %v312_v2  ;;  %vm403_vm3 = vcmp.gt.f32.partialorder %v319_v9, 0.0  ;;  %v406_v16 = vmul.f32 %v319_v9, %v313_v3 }
  0x78   : > { %618 = vmatpush3.msra.mxu0 %v320_v10  ;;  %v405_v18 = vsel %vm403_vm3, %v404_v13, 1.0 }
  0x79   : > { %620 = vmatmul.mubr.msk.f32.vlgmr.msra.gmra.mrb[0].mxu0 %vm328_vm2, %v321_v11 }
  0xe7   : > { %v326_v12 = vpop.permute.xlu0 %325 }
 0x14c   : > { %v398_v14 = vpop.f32.mrb[0].mxu0 }
 0x14d   : > { %v399_v15 = vadd.f32 %v398_v14, %v326_v12  ;;  %v621_v17 = vpop.f32.mrb[1].mxu0 }
 0x14f   : > { %v402_v19 = vadd.f32 %v399_v15, %v399_v15 }
 0x151   : > { %v407_v20 = vmul.f32 %v405_v18, %v402_v19  ;;  %v409_v21 = vmul.f32 %v406_v16, %v402_v19 }
 0x153   : > { %408 = vst [vmem:[%s304_s15] sm:$0xff] %v407_v20  ;;  %410 = vst [vmem:[%s311_s28] sm:$0xff] %v409_v21 }
 0x154   : > { %789 = shalt.err (!%p786_p2)
}
 0x155   : > { %s790_s10 = scalar_lea.hbm %s1152_s22, 128  ;;  %s794_s0 = scalar_lea.hbm %s1239_s4, 512 }
 0x156   : > { %p791_p9 = scmp.ne.s32.totalorder %s1152_s22, %s790_s10  ;;  %p795_p6 = scmp.lt.u32.totalorder %s1152_s22, %s1239_s4 }
 0x157   : > { %p796_p13 = scmp.lt.u32.totalorder %s794_s0, %s790_s10  ;;  %p798_p0 = scmp.lt.u32.totalorder %s790_s10, %s1152_s22 }
 0x158   : > { %p792_p12 = pnand %p791_p9, %p1263_p5 }
 0x159   : > { %p797_p8 = por %p796_p13, %p795_p6 }
 0x15a   : > { %p793_p4 = pneg %p792_p12 }
 0x15b   : > { %p799_p7 = por %p798_p0, %p797_p8 }
 0x15d   : > { %p800_p3 = pnand %p799_p7, %p793_p4 }
 0x15f   : > { %803 = shalt.err (!%p800_p3)
}
 0x160   : > { %626 = dma.vmem_to_hbm [thread:$0]  (%p1263_p5), %s1154_s17, 128, %s1152_s22, %s412_s16  }
 0x161   : > { %s417_s6 = scalar_lea.sflag [#allocation9], %s1122_s27  ;;  %s804_s8 = scalar_lea.vmem %s1161_s26, 128 }
 0x162   : > { %p805_p10 = scmp.ne.s32.totalorder %s1161_s26, %s804_s8  ;;  %s918_s29 = smov [#allocation8]  }
 0x163   : > { %s808_s11 = sshll.u32 %s918_s29, 4  ;;  %s809_s11 = int_to_ptr.vmem [resolvable:$false] %s808_s11 }
 0x164   : > { %p806_p11 = pnand %p805_p10, %p1263_p5  ;;  %s810_s13 = scalar_lea.vmem %s809_s11, 256 }
 0x165   : > { %p811_p2 = scmp.lt.s32.totalorder %s1161_s26, %s809_s11  ;;  %p812_p9 = scmp.lt.s32.totalorder %s810_s13, %s804_s8 }
 0x166   : > { %p807_p1 = pneg %p806_p11 }
 0x167   : > { %p813_p12 = por %p812_p9, %p811_p2 }
 0x169   : > { %p814_p4 = pnand %p813_p12, %p807_p1 }
 0x16b   : > { %817 = shalt.err (!%p814_p4)
}
 0x16c   : > { %s818_s27 = scalar_lea.hbm %s1159_s7, 128  ;;  %s822_s16 = scalar_lea.hbm %s1240_s5, 512 }
 0x16d   : > { %p819_p6 = scmp.ne.s32.totalorder %s1159_s7, %s818_s27  ;;  %p823_p0 = scmp.lt.u32.totalorder %s1159_s7, %s1240_s5 }
 0x16e   : > { %p824_p7 = scmp.lt.u32.totalorder %s822_s16, %s818_s27  ;;  %p826_p10 = scmp.lt.u32.totalorder %s818_s27, %s1159_s7 }
 0x16f   : > { %p820_p13 = pnand %p819_p6, %p1263_p5 }
 0x170   : > { %p825_p3 = por %p824_p7, %p823_p0 }
 0x171   : > { %p821_p8 = pneg %p820_p13 }
 0x172   : > { %p827_p11 = por %p826_p10, %p825_p3 }
 0x174   : > { %p828_p1 = pnand %p827_p11, %p821_p8 }
 0x176   : > { %831 = shalt.err (!%p828_p1)
}
 0x177   : > { %627 = dma.vmem_to_hbm [thread:$0]  (%p1263_p5), %s1161_s26, 128, %s1159_s7, %s417_s6  }
 0x178 PF: > { %p645_p2 = scmp.ge.s32.totalorder %s910_s25, 2  ;;  %s459_s28 = sand.u32 1, %s882_s18  }
 0x179   : > { %p1264_p9 = scmp.ne.s32.totalorder %s1253_s12, 0  ;;  %s460_s0 = scalar_lea.sflag [#allocation4], %s459_s28 }
 0x17b   : > { %p638_p12 = pnand %p645_p2, %p1264_p9 }
 0x17d   : > { %873 = dma.done.wait (!%p638_p12), %s460_s0, 128  }
 0x17e   : > { %875 = vsyncadd (!%p638_p12), %s460_s0, 4294967168  ;;  %s469_s30 = scalar_lea.sflag [#allocation9], %s459_s28 }
 0x17f   : > { %877 = dma.done.wait (!%p638_p12), %s469_s30, 128  }
 0x180   : > { %879 = vsyncadd (!%p638_p12), %s469_s30, 4294967168  ;;  %s28_s25 = sadd.s32 1, %s910_s25   ;;  %s1265_s9 = sld [smem:[#allocation14_spill]] }
 0x181   : > { %p25_p4 = scmp.ge.s32.totalorder %s28_s25, 6   ;;  %s1266_s26 = sld [smem:[#allocation15_spill]] }
 0x182   : > { %s1267_s18 = smov %s886_s19  ;;  %s1268_s19 = smov %s890_s20 }
 0x183   : > { %s1269_s20 = smov %s1029_s14  ;;  %s1270_s21 = smov %s902_s23 }
 0x184   : > { %s1271_s22 = smov %s906_s24  ;;  %27 = sbr.rel (!%p25_p4) target bundleno = 13 (0xd), region = 111 }
 0x186   : > { %s1272_s23 = smov %s1265_s9 }
 0x187   : > { %s1273_s24 = smov %s1266_s26 }
 0x18b   :  { %474 = vsyncpa [#allocation3], 1 }
 0x18c   :  { %476 = vsyncpa [#allocation3 + $0x1], 1 }
 0x18d   :  { %477 = vsyncpa [#allocation6], 1 }
 0x18e   :  { %479 = vsyncpa [#allocation6 + $0x1], 1 }
 0x18f   :  { %480 = vsyncpa [#allocation4], 1 }
 0x190   :  { %482 = vsyncpa [#allocation4 + $0x1], 1 }
 0x191   :  { %483 = vsyncpa [#allocation9], 1 }
 0x192   :  { %485 = vsyncpa [#allocation9 + $0x1], 1 }

</bundles_post_ra>
